<compile_context>
chip_gen: v6e
topology: v6e:2x2x1
jax: 0.10.0
libtpu: 0.0.40
codegen_flags: <defaults>
</compile_context>

<pallas_src>
import functools

import jax
import jax.numpy as jnp
from jax.experimental import pallas as pl
from jax.experimental.pallas import tpu as pltpu

_LANE = 128
_SUBLANE = 8


def _round_up(n: int, m: int) -> int:
    return ((n + m - 1) // m) * m


def _pick_divisor_tile(dim: int, candidates=(512, 256, 128)) -> int:
    """Largest candidate that exactly divides dim, else the full dim."""
    for c in candidates:
        if dim % c == 0:
            return c
    return dim


def _vmem_budget_bytes() -> int:
    """Per-generation VMEM budget (v5e/v6e: 128 MiB, v7x: 64 MiB physical)."""
    try:
        cap = pltpu.get_tpu_info().vmem_capacity_bytes
        return int(cap * 0.7)
    except Exception:
        return 40 << 20  # conservative: fits every generation's physical VMEM


# --------------------------------------------------------------------------
# Parameter preparation (done once, outside the forward path)
# --------------------------------------------------------------------------
def init_mlp_params(key, input_size, output_size, hidden_size, num_layers):
    """Deterministic parameter init (PyTorch-Linear-style uniform bounds)."""
    sizes = [input_size] + [hidden_size] * num_layers + [output_size]
    params = []
    for fin, fout in zip(sizes[:-1], sizes[1:]):
        key, kw, kb = jax.random.split(key, 3)
        bound = 1.0 / jnp.sqrt(jnp.float32(fin))
        w = jax.random.uniform(kw, (fin, fout), jnp.float32, -bound, bound)
        b = jax.random.uniform(kb, (1, fout), jnp.float32, -bound, bound)
        params.append((w, b))
    return params


def prepare_mlp_params(params, matmul_dtype=jnp.bfloat16):
    """Pad output-feature dims to multiples of 128 and cast matmul operands.

    Padding is exact: padded weight cols / bias entries are 0, tanh(0)=0, and
    padded weight rows only ever multiply those zero activation columns.  The
    first layer's K dim is left unpadded (a whole-array block is legal); every
    later K equals the previous padded output width, hence already 128-aligned.
    Returns (padded_layers, out_features).
    """
    out_features = params[-1][0].shape[1]
    layers = []
    in_p = params[0][0].shape[0]
    for (w, b) in params:
        fi, fo = w.shape
        fo_p = _round_up(fo, _LANE)
        w_p = jnp.zeros((in_p, fo_p), matmul_dtype).at[:fi, :fo].set(
            w.astype(matmul_dtype))
        b_p = jnp.zeros((1, fo_p), jnp.float32).at[:, :fo].set(
            b.astype(jnp.float32))
        layers.append((w_p, b_p))
        in_p = fo_p
    return layers, out_features


# --------------------------------------------------------------------------
# Fused path: all layers in one pallas_call, weights VMEM-resident
# --------------------------------------------------------------------------
def _fused_mlp_kernel(*refs, num_linear: int):
    """refs = (x_ref, w0, b0, ..., w{L-1}, b{L-1}, o_ref)."""
    x_ref = refs[0]
    o_ref = refs[1 + 2 * num_linear]
    y = x_ref[...].astype(refs[1].dtype)          # bf16 matmul operand
    for i in range(num_linear):
        w_ref = refs[1 + 2 * i]
        b_ref = refs[2 + 2 * i]
        acc = jnp.dot(y, w_ref[...], preferred_element_type=jnp.float32)
        acc = acc + b_ref[...]                    # f32 bias add (VPU)
        if i < num_linear - 1:
            y = jnp.tanh(acc).astype(w_ref.dtype)  # f32 tanh (EUP) -> bf16
        else:
            o_ref[...] = acc.astype(o_ref.dtype)


def _fused_vmem_estimate(layers, tile_b, fin):
    w_bytes = sum(int(w.size) * w.dtype.itemsize + int(b.size) * b.dtype.itemsize
                  for w, b in layers)
    widths = [fin] + [w.shape[1] for w, _ in layers]
    io_bytes = 2 * tile_b * fin * 4 + 2 * tile_b * widths[-1] * 4  # x + out, 2-deep
    act_bytes = 2 * tile_b * max(widths) * 4                       # live intermediates
    return w_bytes + io_bytes + act_bytes


def _fused_forward(x, layers, tile_b, grid_b, vmem_limit_bytes):
    B, fin = x.shape
    num_linear = len(layers)
    fout_p = layers[-1][0].shape[1]

    in_specs = [pl.BlockSpec((tile_b, fin), lambda i: (i, 0))]
    flat_args = [x]
    for (w_p, b_p) in layers:
        # Constant index_map + single buffer: resident in VMEM, no 2x waste.
        in_specs.append(pl.BlockSpec(w_p.shape, lambda i: (0, 0),
                                     pipeline_mode=pl.Buffered(1)))
        in_specs.append(pl.BlockSpec(b_p.shape, lambda i: (0, 0),
                                     pipeline_mode=pl.Buffered(1)))
        flat_args.append(w_p)
        flat_args.append(b_p)

    kernel = functools.partial(_fused_mlp_kernel, num_linear=num_linear)
    return pl.pallas_call(
        kernel,
        out_shape=jax.ShapeDtypeStruct((B, fout_p), jnp.float32),
        grid_spec=pltpu.PrefetchScalarGridSpec(
            num_scalar_prefetch=0,
            grid=(grid_b,),
            in_specs=in_specs,
            out_specs=pl.BlockSpec((tile_b, fout_p), lambda i: (i, 0)),
        ),
        compiler_params=pltpu.CompilerParams(
            dimension_semantics=("parallel",),      # batch tiles independent
            vmem_limit_bytes=vmem_limit_bytes,
        ),
    )(*flat_args)


# --------------------------------------------------------------------------
# Fallback path: per-layer tiled matmul (large models, weights not resident)
# --------------------------------------------------------------------------
def _linear_block_kernel(x_ref, w_ref, b_ref, o_ref, acc_ref, *, apply_tanh):
    @pl.when(pl.program_id(2) == 0)
    def _():
        acc_ref[...] = jnp.zeros_like(acc_ref)

    acc_ref[...] += jnp.dot(x_ref[...].astype(w_ref.dtype), w_ref[...],
                            preferred_element_type=jnp.float32)

    @pl.when(pl.program_id(2) == pl.num_programs(2) - 1)
    def _():
        y = acc_ref[...] + b_ref[...]
        if apply_tanh:
            y = jnp.tanh(y)
        o_ref[...] = y.astype(o_ref.dtype)


def _linear_layer(x, w, b, *, apply_tanh, tile_b, out_dtype):
    B, K = x.shape
    _, N = w.shape
    tn = _pick_divisor_tile(N)
    tk = _pick_divisor_tile(K)
    grid = (pl.cdiv(B, tile_b), N // tn, K // tk)
    kernel = functools.partial(_linear_block_kernel, apply_tanh=apply_tanh)
    return pl.pallas_call(
        kernel,
        out_shape=jax.ShapeDtypeStruct((B, N), out_dtype),
        grid_spec=pltpu.PrefetchScalarGridSpec(
            num_scalar_prefetch=0,
            grid=grid,
            in_specs=[
                pl.BlockSpec((tile_b, tk), lambda i, j, k: (i, k)),
                pl.BlockSpec((tk, tn), lambda i, j, k: (k, j)),
                pl.BlockSpec((1, tn), lambda i, j, k: (0, j)),
            ],
            out_specs=pl.BlockSpec((tile_b, tn), lambda i, j, k: (i, j)),
            scratch_shapes=[pltpu.VMEM((tile_b, tn), jnp.float32)],
        ),
        compiler_params=pltpu.CompilerParams(
            dimension_semantics=("parallel", "parallel", "arbitrary"),
        ),
    )(x, w, b)


# --------------------------------------------------------------------------
# Top-level forward
# --------------------------------------------------------------------------
def _batch_tiling(B, tile_b_cap, min_batch_tiles):
    """Balanced batch tiles: <=7 padded rows per tile, >=min tiles when B allows."""
    n_tiles = max(pl.cdiv(B, tile_b_cap),
                  min(min_batch_tiles, pl.cdiv(B, _SUBLANE)))
    if n_tiles <= 1:
        return B, 1                      # single whole-batch block (any B)
    tile_b = _round_up(pl.cdiv(B, n_tiles), _SUBLANE)
    return tile_b, pl.cdiv(B, tile_b)    # ragged last tile handled by Pallas


def mlp_forward(x, prepared, *, tile_b_cap=512, min_batch_tiles=4,
                vmem_budget_bytes=None, force_fallback=False):
    """Apply the MLP. x: [B, Fin] f32; prepared: output of prepare_mlp_params."""
    layers, out_features = prepared
    B, _ = x.shape
    fin = x.shape[1]
    tile_b, grid_b = _batch_tiling(B, tile_b_cap, min_batch_tiles)

    budget = vmem_budget_bytes if vmem_budget_bytes is not None else _vmem_budget_bytes()
    estimate = _fused_vmem_estimate(layers, tile_b, fin)

    if (not force_fallback) and estimate + estimate // 4 <= budget:
        vmem_limit = int(min(budget, 100 * 1024 * 1024))
        out = _fused_forward(x, layers, tile_b, grid_b, vmem_limit)
    else:
        # Weights too large for all-layer residency: per-layer tiled matmuls,
        # inter-layer activations round-trip HBM in bf16.
        y = x
        n = len(layers)
        for idx, (w_p, b_p) in enumerate(layers):
            last = idx == n - 1
            y = _linear_layer(y, w_p, b_p, apply_tanh=not last, tile_b=tile_b,
                              out_dtype=jnp.float32 if last else w_p.dtype)
        out = y

    fout_p = layers[-1][0].shape[1]
    if fout_p != out_features:
        out = out[:, :out_features]
    return out


def mlp_reference(x, params, matmul_dtype=jnp.bfloat16):
    """Plain-JAX reference with the same bf16-operand / f32-accumulate recipe."""
    n = len(params)
    y = x
    for i, (w, b) in enumerate(params):
        y = jnp.dot(y.astype(matmul_dtype), w.astype(matmul_dtype),
                    preferred_element_type=jnp.float32) + b
        if i < n - 1:
            y = jnp.tanh(y)
    return y


if __name__ == "__main__":
    # Small shapes consistent with the module's forward: x is [batch, input_size].
    batch = 8
    input_size = 32
    hidden_size = 64
    output_size = 16
    num_layers = 2  # -> Linear+Tanh, Linear+Tanh, Linear

    key = jax.random.PRNGKey(0)
    key, kx = jax.random.split(key)
    x = jax.random.normal(kx, (batch, input_size), dtype=jnp.float32)
    params = init_mlp_params(key, input_size, output_size, hidden_size, num_layers)

    # One-time padding + bf16 cast (outside the forward path).
    prepared = prepare_mlp_params(params)

    out = jax.block_until_ready(mlp_forward(x, prepared))
    ref = mlp_reference(x, params)
    assert out.shape == (batch, output_size)
    assert jnp.allclose(out, ref, atol=2e-3, rtol=2e-3), "fused path mismatch"

    # Also exercise the large-model fallback path (per-layer tiled matmuls).
    out_fb = jax.block_until_ready(mlp_forward(x, prepared, force_fallback=True))
    assert jnp.allclose(out_fb, ref, atol=2e-3, rtol=2e-3), "fallback path mismatch"

    print("KERNEL_OK")
</pallas_src>

<mosaic_0001>
module attributes {stable_mosaic.version = 11 : i64} {
  func.func @_fused_mlp_kernel(%arg0: i32, %arg1: memref<8x32xf32, #tpu.memory_space<vmem>>, %arg2: memref<32x128xbf16, #tpu.memory_space<vmem>>, %arg3: memref<1x128xf32, #tpu.memory_space<vmem>>, %arg4: memref<128x128xbf16, #tpu.memory_space<vmem>>, %arg5: memref<1x128xf32, #tpu.memory_space<vmem>>, %arg6: memref<128x128xbf16, #tpu.memory_space<vmem>>, %arg7: memref<1x128xf32, #tpu.memory_space<vmem>>, %arg8: memref<8x128xf32, #tpu.memory_space<vmem>>) attributes {dimension_semantics = [#tpu.dimension_semantics<parallel>], iteration_bounds = array<i64: 1>, scalar_prefetch = 0 : i64, scratch_operands = 0 : i64, tpu.core_type = #tpu.core_type<tc>, window_params = [{transform_indices = @transform_0, window_bounds = array<i64: 8, 32>}, {pipeline_mode = #tpu.pipeline_mode<synchronous>, transform_indices = @transform_1, window_bounds = array<i64: 32, 128>}, {pipeline_mode = #tpu.pipeline_mode<synchronous>, transform_indices = @transform_2, window_bounds = array<i64: 1, 128>}, {pipeline_mode = #tpu.pipeline_mode<synchronous>, transform_indices = @transform_3, window_bounds = array<i64: 128, 128>}, {pipeline_mode = #tpu.pipeline_mode<synchronous>, transform_indices = @transform_4, window_bounds = array<i64: 1, 128>}, {pipeline_mode = #tpu.pipeline_mode<synchronous>, transform_indices = @transform_5, window_bounds = array<i64: 128, 128>}, {pipeline_mode = #tpu.pipeline_mode<synchronous>, transform_indices = @transform_6, window_bounds = array<i64: 1, 128>}, {transform_indices = @transform_7, window_bounds = array<i64: 8, 128>}]} {
    %c0 = arith.constant 0 : index
    %c0_0 = arith.constant 0 : index
    %0 = vector.load %arg1[%c0, %c0_0] : memref<8x32xf32, #tpu.memory_space<vmem>>, vector<8x32xf32>
    %1 = arith.truncf %0 : vector<8x32xf32> to vector<8x32xbf16>
    %c0_1 = arith.constant 0 : index
    %c0_2 = arith.constant 0 : index
    %2 = vector.load %arg2[%c0_1, %c0_2] : memref<32x128xbf16, #tpu.memory_space<vmem>>, vector<32x128xbf16>
    %cst = arith.constant dense<0.000000e+00> : vector<8x128xf32>
    %3 = tpu.matmul %1, %2, %cst {dimension_numbers = #tpu.dot_dimension_numbers<[1], [0], [0], [1], [0, 0, 1, 1], [], []>} : vector<8x32xbf16>, vector<32x128xbf16>, vector<8x128xf32> -> vector<8x128xf32>
    %c0_3 = arith.constant 0 : index
    %c0_4 = arith.constant 0 : index
    %4 = vector.load %arg3[%c0_3, %c0_4] : memref<1x128xf32, #tpu.memory_space<vmem>>, vector<1x128xf32>
    %5 = vector.broadcast %4 : vector<1x128xf32> to vector<8x128xf32>
    %6 = arith.addf %3, %5 : vector<8x128xf32>
    %7 = math.tanh %6 : vector<8x128xf32>
    %8 = arith.truncf %7 : vector<8x128xf32> to vector<8x128xbf16>
    %c0_5 = arith.constant 0 : index
    %c0_6 = arith.constant 0 : index
    %9 = vector.load %arg4[%c0_5, %c0_6] : memref<128x128xbf16, #tpu.memory_space<vmem>>, vector<128x128xbf16>
    %cst_7 = arith.constant dense<0.000000e+00> : vector<8x128xf32>
    %10 = tpu.matmul %8, %9, %cst_7 {dimension_numbers = #tpu.dot_dimension_numbers<[1], [0], [0], [1], [0, 0, 1, 1], [], []>} : vector<8x128xbf16>, vector<128x128xbf16>, vector<8x128xf32> -> vector<8x128xf32>
    %c0_8 = arith.constant 0 : index
    %c0_9 = arith.constant 0 : index
    %11 = vector.load %arg5[%c0_8, %c0_9] : memref<1x128xf32, #tpu.memory_space<vmem>>, vector<1x128xf32>
    %12 = vector.broadcast %11 : vector<1x128xf32> to vector<8x128xf32>
    %13 = arith.addf %10, %12 : vector<8x128xf32>
    %14 = math.tanh %13 : vector<8x128xf32>
    %15 = arith.truncf %14 : vector<8x128xf32> to vector<8x128xbf16>
    %c0_10 = arith.constant 0 : index
    %c0_11 = arith.constant 0 : index
    %16 = vector.load %arg6[%c0_10, %c0_11] : memref<128x128xbf16, #tpu.memory_space<vmem>>, vector<128x128xbf16>
    %cst_12 = arith.constant dense<0.000000e+00> : vector<8x128xf32>
    %17 = tpu.matmul %15, %16, %cst_12 {dimension_numbers = #tpu.dot_dimension_numbers<[1], [0], [0], [1], [0, 0, 1, 1], [], []>} : vector<8x128xbf16>, vector<128x128xbf16>, vector<8x128xf32> -> vector<8x128xf32>
    %c0_13 = arith.constant 0 : index
    %c0_14 = arith.constant 0 : index
    %18 = vector.load %arg7[%c0_13, %c0_14] : memref<1x128xf32, #tpu.memory_space<vmem>>, vector<1x128xf32>
    %19 = vector.broadcast %18 : vector<1x128xf32> to vector<8x128xf32>
    %20 = arith.addf %17, %19 : vector<8x128xf32>
    %c0_15 = arith.constant 0 : index
    %c0_16 = arith.constant 0 : index
    %21 = vector.load %arg8[%c0_15, %c0_16] : memref<8x128xf32, #tpu.memory_space<vmem>>, vector<8x128xf32>
    tpu.vector_store %arg8[%c0_15, %c0_16], %20 {strides = array<i32>} : memref<8x128xf32, #tpu.memory_space<vmem>>, vector<8x128xf32>,
    return
  }
  func.func @transform_0(%arg0: i32) -> (i32, i32) {
    %c0_i32 = arith.constant 0 : i32
    %c0_i32_0 = arith.constant 0 : i32
    return %arg0, %c0_i32 : i32, i32
  }
  func.func @transform_1(%arg0: i32) -> (i32, i32) {
    %c0_i32 = arith.constant 0 : i32
    %c0_i32_0 = arith.constant 0 : i32
    %c0_i32_1 = arith.constant 0 : i32
    return %c0_i32, %c0_i32_0 : i32, i32
  }
  func.func @transform_2(%arg0: i32) -> (i32, i32) {
    %c0_i32 = arith.constant 0 : i32
    %c0_i32_0 = arith.constant 0 : i32
    %c0_i32_1 = arith.constant 0 : i32
    return %c0_i32, %c0_i32_0 : i32, i32
  }
  func.func @transform_3(%arg0: i32) -> (i32, i32) {
    %c0_i32 = arith.constant 0 : i32
    %c0_i32_0 = arith.constant 0 : i32
    %c0_i32_1 = arith.constant 0 : i32
    return %c0_i32, %c0_i32_0 : i32, i32
  }
  func.func @transform_4(%arg0: i32) -> (i32, i32) {
    %c0_i32 = arith.constant 0 : i32
    %c0_i32_0 = arith.constant 0 : i32
    %c0_i32_1 = arith.constant 0 : i32
    return %c0_i32, %c0_i32_0 : i32, i32
  }
  func.func @transform_5(%arg0: i32) -> (i32, i32) {
    %c0_i32 = arith.constant 0 : i32
    %c0_i32_0 = arith.constant 0 : i32
    %c0_i32_1 = arith.constant 0 : i32
    return %c0_i32, %c0_i32_0 : i32, i32
  }
  func.func @transform_6(%arg0: i32) -> (i32, i32) {
    %c0_i32 = arith.constant 0 : i32
    %c0_i32_0 = arith.constant 0 : i32
    %c0_i32_1 = arith.constant 0 : i32
    return %c0_i32, %c0_i32_0 : i32, i32
  }
  func.func @transform_7(%arg0: i32) -> (i32, i32) {
    %c0_i32 = arith.constant 0 : i32
    %c0_i32_0 = arith.constant 0 : i32
    return %arg0, %c0_i32 : i32, i32
  }
}

</mosaic_0001>

<bundles_post_ra>
// kernel: tpu_custom_call.1
= control target key start
LH: loop header
LB: loop body
LE: loop exit
PB: predicated region body
PF: predicated region fallthrough
CT: control target
= control target key end

     0   :  { %12 = vsyncpa [#allocation3], 0  ;;  %s730_s0 = inlined_call_operand.hbm [shape: f32[8,32], index: 0, kind: input, shape index: {}]   ;;  %s731_s1 = inlined_call_operand.hbm [shape: bf16[32,128], index: 1, kind: input, shape index: {}]   ;;  %s732_s2 = inlined_call_operand.vmem [shape: f32[1,128], index: 2, kind: input, shape index: {}]   ;;  %s733_s3 = inlined_call_operand.hbm [shape: bf16[128,128], index: 3, kind: input, shape index: {}]   ;;  %s734_s4 = inlined_call_operand.vmem [shape: f32[1,128], index: 4, kind: input, shape index: {}]   ;;  %s735_s5 = inlined_call_operand.hbm [shape: bf16[128,128], index: 5, kind: input, shape index: {}]   ;;  %s736_s6 = inlined_call_operand.vmem [shape: f32[1,128], index: 6, kind: input, shape index: {}]   ;;  %s737_s7 = inlined_call_operand.hbm [shape: f32[8,128], index: 7, kind: output, shape index: {}]  }
   0x1   :  { %13 = vsyncpa [#allocation6], 0 }
   0x2   :  { %14 = vsyncpa [#allocation9], 0 }
   0x3   :  { %15 = vsyncpa [#allocation4], 0  ;;  %s624_s24 = smov [#allocation5]  }
   0x4   :  { %s31_s25 = sshll.u32 %s624_s24, 4  ;;  %s32_s25 = int_to_ptr.vmem [resolvable:$true] %s31_s25 }
   0x5   :  { %s524_s26 = scalar_lea.vmem %s32_s25, 256  ;;  %p529_p1 = scmp.lt.s32.totalorder %s32_s25, %s32_s25 }
   0x6   :  { %p525_p0 = scmp.ne.s32.totalorder %s32_s25, %s524_s26  ;;  %p530_p2 = scmp.lt.s32.totalorder %s524_s26, %s524_s26 }
   0x8   :  { %p531_p3 = por %p530_p2, %p529_p1 }
   0xa   :  { %p532_p4 = pnand %p531_p3, %p525_p0 }
   0xc   :  { %535 = shalt.err (!%p532_p4)
}
   0xd   :  { %s625_s27 = smov 64   ;;  %s626_s28 = smov 4  }
   0xe   :  { %37 = dma.hbm_to_vmem [thread:$0]  %s731_s1, 256, %s32_s25, [#allocation6], %s625_s27, %s625_s27, %s626_s28  }
   0xf   :  { %s627_s8 = smov [#allocation2]   ;;  %s628_s10 = smov [#allocation7]  }
  0x10   :  { %s22_s9 = sshll.u32 %s627_s8, 4  ;;  %s45_s11 = sshll.u32 %s628_s10, 4  ;;  %s23_s9 = int_to_ptr.vmem [resolvable:$true] %s22_s9  ;;  %s46_s11 = int_to_ptr.vmem [resolvable:$true] %s45_s11 }
  0x11   :  { %s544_s12 = scalar_lea.vmem %s23_s9, 128  ;;  %p549_p6 = scmp.lt.s32.totalorder %s23_s9, %s23_s9 }
  0x12   :  { %p545_p5 = scmp.ne.s32.totalorder %s23_s9, %s544_s12  ;;  %p550_p7 = scmp.lt.s32.totalorder %s544_s12, %s544_s12 }
  0x14   :  { %p551_p8 = por %p550_p7, %p549_p6 }
  0x16   :  { %p552_p9 = pnand %p551_p8, %p545_p5 }
  0x18   :  { %555 = shalt.err (!%p552_p9)
}
  0x19   :  { %25 = dma.hbm_to_vmem [thread:$0]  %s730_s0, 128, %s23_s9, [#allocation3]  }
  0x1a   :  { %s564_s15 = scalar_lea.vmem %s46_s11, 1024  ;;  %p569_p11 = scmp.lt.s32.totalorder %s46_s11, %s46_s11 }
  0x1b   :  { %p565_p10 = scmp.ne.s32.totalorder %s46_s11, %s564_s15  ;;  %p570_p12 = scmp.lt.s32.totalorder %s564_s15, %s564_s15 }
  0x1d   :  { %p571_p13 = por %p570_p12, %p569_p11 }
  0x1f   :  { %p572_p0 = pnand %p571_p13, %p565_p10 }
  0x21   :  { %575 = shalt.err (!%p572_p0)
}
  0x22   :  { %51 = dma.hbm_to_vmem [thread:$0]  %s733_s3, 1024, %s46_s11, [#allocation6], %s625_s27, %s625_s27, %s626_s28  }
  0x23   :  { %s629_s17 = smov [#allocation8]  }
  0x24   :  { %s59_s18 = sshll.u32 %s629_s17, 4  ;;  %s60_s18 = int_to_ptr.vmem [resolvable:$true] %s59_s18 }
  0x25   :  { %s584_s19 = scalar_lea.vmem %s60_s18, 1024  ;;  %p589_p2 = scmp.lt.s32.totalorder %s60_s18, %s60_s18 }
  0x26   :  { %p585_p1 = scmp.ne.s32.totalorder %s60_s18, %s584_s19  ;;  %p590_p3 = scmp.lt.s32.totalorder %s584_s19, %s584_s19 }
  0x28   :  { %p591_p4 = por %p590_p3, %p589_p2 }
  0x2a   :  { %p592_p5 = pnand %p591_p4, %p585_p1 }
  0x2c   :  { %595 = shalt.err (!%p592_p5)
}
  0x2d   :  { %65 = dma.hbm_to_vmem [thread:$0]  %s735_s5, 1024, %s60_s18, [#allocation9], %s625_s27, %s625_s27, %s626_s28  }
  0x2e   :  { %616 = dma.done.wait [#allocation3], 128  }
  0x2f   :  { %617 = vsyncadd [#allocation3], 4294967168 }
  0x30   :  { %618 = dma.done.wait [#allocation6], 1280  }
  0x31   :  { %619 = vsyncadd [#allocation6], 4294966016 }
  0x32   :  { %620 = dma.done.wait [#allocation9], 1024  }
  0x33   :  { %621 = vsyncadd [#allocation9], 4294966272  ;;  %v630_v0 = vmov 0.0   ;;  %vm631_vm0 = vmmov 0   ;;  %v494_v1 = vld [vmem:[#allocation5 + $0x8] sm:$0xff]   ;;  %v495_v2 = vld [vmem:[#allocation5] sm:$0xff]  }
  0x34   :  { %437 = vmatprep.subr.bf16.mxu0 %v630_v0  ;;  %441 = vmatprep.mubr.msk.bf16.mxu0 %vm631_vm0, %v630_v0  ;;  %v81_v3 = vld [vmem:[#allocation2] sm:$0xff]  ;;  %v496_v4 = vld [vmem:[#allocation7 + $0x38] sm:$0xff]   ;;  %vm106_vm1 = vcmask 261120   ;;  %v497_v6 = vld [vmem:[#allocation7 + $0x30] sm:$0xff]   ;;  %s632_s24 = smov [#allocation10]  }
  0x35   :  { %445 = vmatprep.subr.bf16.mxu1 %v630_v0  ;;  %461 = vmatprep.mubr.msk.bf16.mxu1 %vm631_vm0, %v630_v0  ;;  %v82_v5 = vpack.c.bf16 %v81_v3, %v81_v3  ;;  %v498_v7 = vld [vmem:[#allocation7 + $0x28] sm:$0xff]   ;;  %v499_v8 = vld [vmem:[#allocation7 + $0x20] sm:$0xff]   ;;  %v500_v9 = vld [vmem:[#allocation7 + $0x18] sm:$0xff]   ;;  %s383_s25 = sshll.u32 %s632_s24, 4  ;;  %s384_s25 = int_to_ptr.vmem [resolvable:$true] %s383_s25 }
  0x36   :  { %438 = vmatpush3.bf16.msra.mxu0 %v494_v1  ;;  %446 = vmatpush3.bf16.msra.mxu1 %v496_v4  ;;  %v501_v10 = vld [vmem:[#allocation7 + $0x10] sm:$0xff]   ;;  %v502_v11 = vld [vmem:[#allocation7 + $0x8] sm:$0xff]   ;;  %v503_v12 = vld [vmem:[#allocation7] sm:$0xff]   ;;  %p601_p7 = scmp.lt.s32.totalorder %s384_s25, %s384_s25 }
  0x37   :  { %439 = vmatprep.subr.bf16.mxu0 %v630_v0  ;;  %447 = vmatprep.subr.bf16.mxu1 %v630_v0  ;;  %v504_v13 = vld [vmem:[#allocation8 + $0x38] sm:$0xff]   ;;  %v505_v14 = vld [vmem:[#allocation8 + $0x30] sm:$0xff]   ;;  %v506_v15 = vld [vmem:[#allocation8 + $0x28] sm:$0xff]  }
  0x38   :  { %v394_v16 = vld [vmem:[%s732_s2] ss:$0 sm:$0xff]  ;;  %v507_v24 = vld [vmem:[#allocation8 + $0x20] sm:$0xff]   ;;  %v508_v25 = vld [vmem:[#allocation8 + $0x18] sm:$0xff]  }
  0x39   :  { %v509_v26 = vld [vmem:[#allocation8 + $0x10] sm:$0xff]   ;;  %v510_v27 = vld [vmem:[#allocation8 + $0x8] sm:$0xff]   ;;  %v511_v28 = vld [vmem:[#allocation8] sm:$0xff]  }
  0x3a   :  { %440 = vmatpush3.bf16.msra.mxu0 %v495_v2  ;;  %448 = vmatpush3.bf16.msra.mxu1 %v497_v6  ;;  %v398_v29 = vld [vmem:[%s734_s4] ss:$0 sm:$0xff]  ;;  %s596_s4 = scalar_lea.vmem %s384_s25, 128 }
  0x3b   :  { %465 = vmatprep.subr.bf16.mxu0 %v630_v0  ;;  %449 = vmatprep.subr.bf16.mxu1 %v630_v0  ;;  %v407_v37 = vld [vmem:[%s736_s6] ss:$0 sm:$0xff]  ;;  %p597_p6 = scmp.ne.s32.totalorder %s384_s25, %s596_s4  ;;  %p602_p8 = scmp.lt.s32.totalorder %s596_s4, %s596_s4 }
  0x3d   :  { %442 = vmatmul.mubr.msk.bf16.vlgmr.msra.gmra.mxu0 %vm106_vm1, %v82_v5  ;;  %p603_p9 = por %p602_p8, %p601_p7 }
  0x3e   :  { %481 = vmatprep.mubr.msk.bf16.mxu0 %vm631_vm0, %v630_v0  ;;  %450 = vmatpush3.bf16.msra.mxu1 %v498_v7 }
  0x3f   :  { %451 = vmatprep.subr.bf16.mxu1 %v630_v0  ;;  %466 = vmatpush3.bf16.msra.mxu0 %v504_v13  ;;  %p604_p10 = pnand %p603_p9, %p597_p6 }
  0x40   :  { %467 = vmatprep.subr.bf16.mxu0 %v630_v0 }
  0x42   :  { %452 = vmatpush3.bf16.msra.mxu1 %v499_v8 }
  0x43   :  { %453 = vmatprep.subr.bf16.mxu1 %v630_v0  ;;  %468 = vmatpush3.bf16.msra.mxu0 %v505_v14 }
  0x44   :  { %469 = vmatprep.subr.bf16.mxu0 %v630_v0 }
  0x46   :  { %454 = vmatpush3.bf16.msra.mxu1 %v500_v9 }
  0x47   :  { %455 = vmatprep.subr.bf16.mxu1 %v630_v0  ;;  %470 = vmatpush3.bf16.msra.mxu0 %v506_v15 }
  0x48   :  { %471 = vmatprep.subr.bf16.mxu0 %v630_v0 }
  0x4a   :  { %456 = vmatpush3.bf16.msra.mxu1 %v501_v10 }
  0x4b   :  { %457 = vmatprep.subr.bf16.mxu1 %v630_v0  ;;  %472 = vmatpush3.bf16.msra.mxu0 %v507_v24 }
  0x4c   :  { %473 = vmatprep.subr.bf16.mxu0 %v630_v0 }
  0x4e   :  { %458 = vmatpush3.bf16.msra.mxu1 %v502_v11 }
  0x4f   :  { %459 = vmatprep.subr.bf16.mxu1 %v630_v0  ;;  %474 = vmatpush3.bf16.msra.mxu0 %v508_v25 }
  0x50   :  { %475 = vmatprep.subr.bf16.mxu0 %v630_v0 }
  0x52   :  { %460 = vmatpush3.bf16.msra.mxu1 %v503_v12 }
  0x53   :  { %476 = vmatpush3.bf16.msra.mxu0 %v509_v26 }
  0x54   :  { %477 = vmatprep.subr.bf16.mxu0 %v630_v0 }
  0x57   :  { %478 = vmatpush3.bf16.msra.mxu0 %v510_v27 }
  0x58   :  { %479 = vmatprep.subr.bf16.mxu0 %v630_v0 }
  0x5b   :  { %480 = vmatpush3.bf16.msra.mxu0 %v511_v28 }
  0xfd   :  { %v144_v17 = vpop.f32.mrf.mxu0 }
  0xfe   :  { %v145_v18 = vadd.f32 %v394_v16, %v144_v17 }
  0xff   :  { %v443_v19 = vpop.f32.mrf.mxu0 }
 0x100   :  { %512 = vtanh.f32 %v145_v18 }
 0x101   :  { %v147_v20 = vpop.f32.mrf.mxu0 }
 0x103   :  { %v444_v21 = vpop.f32.mrf.mxu0 }
 0x10d   :  { %v513_v22 = vpop.eup %512 }
 0x10e   :  { %v151_v23 = vpack.c.bf16 %v513_v22, %v513_v22 }
 0x110   :  { %462 = vmatmul.mubr.bf16.vlgmr.msra.gmra.mxu1 %v151_v23 }
 0x1d0   :  { %v257_v30 = vpop.f32.mrf.mxu1 }
 0x1d1   :  { %v258_v31 = vadd.f32 %v398_v29, %v257_v30 }
 0x1d2   :  { %v463_v32 = vpop.f32.mrf.mxu1 }
 0x1d3   :  { %514 = vtanh.f32 %v258_v31 }
 0x1d4   :  { %v260_v33 = vpop.f32.mrf.mxu1 }
 0x1d6   :  { %v464_v34 = vpop.f32.mrf.mxu1 }
 0x1e0   :  { %v515_v35 = vpop.eup %514 }
 0x1e1   :  { %v264_v36 = vpack.c.bf16 %v515_v35, %v515_v35 }
 0x1e3   :  { %482 = vmatmul.mubr.bf16.vlgmr.msra.gmra.mxu0 %v264_v36 }
 0x2a3   :  { %v370_v38 = vpop.f32.mrf.mxu0 }
 0x2a4   :  { %v371_v39 = vadd.f32 %v407_v37, %v370_v38 }
 0x2a5   :  { %v483_v40 = vpop.f32.mrf.mxu0 }
 0x2a6   :  { %376 = vst [vmem:[#allocation10] sm:$0xff] %v371_v39 }
 0x2a7   :  { %v373_v41 = vpop.f32.mrf.mxu0 }
 0x2a8   :  { %607 = shalt.err (!%p604_p10)
}
 0x2a9   :  { %386 = dma.vmem_to_hbm [thread:$0]  %s384_s25, 128, %s737_s7, [#allocation4]   ;;  %v484_v42 = vpop.f32.mrf.mxu0 }
 0x2aa   :  { %622 = dma.done.wait [#allocation4], 128  }
 0x2ab   :  { %623 = vsyncadd [#allocation4], 4294967168 }
 0x2ac   :  { %390 = vsyncpa [#allocation3], 1 }
 0x2ad   :  { %391 = vsyncpa [#allocation6], 1 }
 0x2ae   :  { %392 = vsyncpa [#allocation9], 1 }
 0x2af   :  { %393 = vsyncpa [#allocation4], 1 }

</bundles_post_ra>
